<compile_context>
chip_gen: v5e
topology: v5e:2x2
jax: 0.10.0
libtpu: 0.0.40
codegen_flags: <defaults>
</compile_context>

<pallas_src>
import math
from functools import partial

import jax
import jax.numpy as jnp
from jax.experimental import pallas as pl
from jax.experimental.pallas import tpu as pltpu

# ---- scaled-down Phi-2 config ----
B = 2                # batch
S = 128              # seq_len (>=128 so MXU row tiles are full height per batch shard)
D = 128              # embed dim   (real: 2560)
H = 4                # num heads   (real: 32)
DH = D // H          # head dim    (real: 80)
ROT = 16             # rotary dims per head (real: 32)
DFF = 4 * D          # MLP inner   (real: 10240)
N_LAYERS = 2         # real: 32
EPS = 1e-5
CAUSAL = True


def _gelu_new(x):
    # HF "gelu_new" (tanh approximation) used by phi-2 MLP
    return 0.5 * x * (1.0 + jnp.tanh(0.7978845608028654 * (x + 0.044715 * x * x * x)))


def _pick_exp_dtype():
    """bf16 exp on chips with a bf16 EUP (v6e / v7x); f32 elsewhere (v4 / v5e)."""
    try:
        kind = jax.devices()[0].device_kind.lower()
    except Exception:
        return jnp.float32
    if ("v6" in kind) or ("v7" in kind) or ("7x" in kind):
        return jnp.bfloat16
    return jnp.float32


# --------------------------------------------------------------------------
# fused multi-layer kernel: grid = (batch, layer); output block is the carry
# --------------------------------------------------------------------------
def phi2_stack_kernel(exp_dtype,
                      x_ref, ln_w_ref, ln_b_ref,
                      wqkv_ref, bqkv_ref, wout_ref, bout_ref,
                      fc1w_ref, fc1b_ref, fc2w_ref, fc2b_ref,
                      cos_ref, sinp_ref, sinm_ref,
                      o_ref, attn_sc):
    l = pl.program_id(1)
    n_layers = pl.num_programs(1)

    # layer 0 of this batch shard: load input into the resident output block
    # (o_ref's block index is constant across the layer axis -> VMEM-resident carry)
    @pl.when(l == 0)
    def _():
        o_ref[...] = x_ref[...]

    x = o_ref[...]                                          # (S, D) f32 residual

    # ---- LayerNorm (f32, VPU) ----
    mu = jnp.mean(x, axis=-1, keepdims=True)
    var = jnp.mean(jnp.square(x - mu), axis=-1, keepdims=True)
    h = (x - mu) * jax.lax.rsqrt(var + EPS)
    h = h * ln_w_ref[0] + ln_b_ref[0]                       # (S, D) f32
    h_bf = h.astype(jnp.bfloat16)

    # ---- fused QKV projection: M = S rows, bf16 operands, f32 accumulation ----
    qkv = jnp.dot(h_bf, wqkv_ref[0],
                  preferred_element_type=jnp.float32) + bqkv_ref[0]   # (S, 3D)

    # ---- partial rotary on the concatenated q|k slab (width 2D, two rolls total).
    #      Tables are zero/one padded outside the rotary lanes of each head, so all
    #      roll wrap-arounds (head and q/k boundaries) are multiplied by zero.
    #      The q half of the tables is pre-scaled by 1/sqrt(DH).
    r2 = ROT // 2
    qk = qkv[:, :2 * D]                                     # (S, 2D) f32
    qk = (qk * cos_ref[...]
          + pltpu.roll(qk, r2, 1) * sinp_ref[...]
          + pltpu.roll(qk, 2 * D - r2, 1) * sinm_ref[...])
    v = qkv[:, 2 * D:]                                      # (S, D) f32

    # ---- causal mask (no batch dim) ----
    row = jax.lax.broadcasted_iota(jnp.int32, (S, S), 0)
    col = jax.lax.broadcasted_iota(jnp.int32, (S, S), 1)
    mask = row >= col

    # ---- causal multi-head attention; per-head outputs assembled into a lane-dense
    #      (S, D) scratch, then ONE (S,D)@(D,D) out-projection matmul.
    for hd in range(H):
        sl = slice(hd * DH, (hd + 1) * DH)
        qh = qk[:, hd * DH:(hd + 1) * DH].astype(jnp.bfloat16)        # scaled q, (S, DH)
        kh = qk[:, D + hd * DH:D + (hd + 1) * DH].astype(jnp.bfloat16)
        vh = v[:, sl].astype(jnp.bfloat16)
        s_ = jax.lax.dot_general(qh, kh, (((1,), (1,)), ((), ())),
                                 preferred_element_type=jnp.float32)  # (S, S) f32
        if CAUSAL:
            s_ = jnp.where(mask, s_, -1e30)
        s_ = s_ - jnp.max(s_, axis=-1, keepdims=True)       # f32 before any cast
        p = jnp.exp(s_.astype(exp_dtype))                   # bf16 exp on v6e/v7x
        denom = jnp.sum(p.astype(jnp.float32), axis=-1, keepdims=True)
        ah = jnp.dot(p.astype(jnp.bfloat16), vh,
                     preferred_element_type=jnp.float32)    # (S, DH) unnormalized
        ah = ah * pl.reciprocal(denom, approx=True)         # normalize (S,DH), not (S,S)
        attn_sc[:, sl] = ah                                 # lane-store into scratch

    attn_out = jnp.dot(attn_sc[...].astype(jnp.bfloat16), wout_ref[0],
                       preferred_element_type=jnp.float32) + bout_ref[0]

    # ---- MLP branch (parallel, consumes the same LN output) ----
    ff = jnp.dot(h_bf, fc1w_ref[0],
                 preferred_element_type=jnp.float32) + fc1b_ref[0]    # (S, DFF)
    ff = _gelu_new(ff)                                                # f32 VPU/EUP
    mlp_out = jnp.dot(ff.astype(jnp.bfloat16), fc2w_ref[0],
                      preferred_element_type=jnp.float32) + fc2b_ref[0]

    # ---- parallel-block sum; dropout is identity (eval) ----
    o_ref[...] = attn_out + mlp_out + x


def phi2_forward(x, params, cos2, sinp2, sinm2, exp_dtype=None):
    """All layers in one pallas_call; hidden state stays resident in VMEM per batch."""
    if exp_dtype is None:
        exp_dtype = _pick_exp_dtype()
    Bx, Sx, Dx = x.shape
    x2 = x.reshape(Bx * Sx, Dx)
    L = params["wqkv"].shape[0]

    def const_spec(a):
        nd = a.ndim
        return pl.BlockSpec(a.shape, lambda b, l, nd=nd: (0,) * nd)

    def layer_spec(a):
        blk = (1,) + tuple(a.shape[1:])
        nz = a.ndim - 1
        return pl.BlockSpec(blk, lambda b, l, nz=nz: (l,) + (0,) * nz)

    param_order = ("ln_w", "ln_b", "wqkv", "bqkv", "wout", "bout",
                   "fc1w", "fc1b", "fc2w", "fc2b")
    plist = [params[k] for k in param_order]

    in_specs = [pl.BlockSpec((Sx, Dx), lambda b, l: (b, 0))]
    in_specs += [layer_spec(p) for p in plist]
    in_specs += [const_spec(cos2), const_spec(sinp2), const_spec(sinm2)]

    out = pl.pallas_call(
        partial(phi2_stack_kernel, exp_dtype),
        out_shape=jax.ShapeDtypeStruct((Bx * Sx, Dx), jnp.float32),
        grid_spec=pltpu.PrefetchScalarGridSpec(
            num_scalar_prefetch=0,
            grid=(Bx, L),
            in_specs=in_specs,
            # constant block index across the layer axis -> output is the layer carry
            out_specs=pl.BlockSpec((Sx, Dx), lambda b, l: (b, 0)),
            scratch_shapes=[pltpu.VMEM((Sx, Dx), jnp.float32)],   # per-head attn assembly
        ),
        compiler_params=pltpu.CompilerParams(
            # batch shards are independent -> "parallel" (2 TCs on v7x);
            # layer axis carries the hidden state -> "arbitrary".
            dimension_semantics=("parallel", "arbitrary"),
            vmem_limit_bytes=32 * 1024 * 1024,
        ),
    )(x2, *plist, cos2, sinp2, sinm2)
    return out.reshape(Bx, Sx, Dx)


# --------------------------------------------------------------------------
# roll-direction probe: one-off at startup, full-row verified, result cached
# --------------------------------------------------------------------------
def _roll_probe_kernel(x_ref, o_ref):
    o_ref[...] = pltpu.roll(x_ref[...], 1, 1)


def _roll_is_reversed():
    x = jax.lax.broadcasted_iota(jnp.float32, (8, 128), 1)
    y = pl.pallas_call(_roll_probe_kernel,
                       out_shape=jax.ShapeDtypeStruct((8, 128), jnp.float32))(x)
    if bool(jnp.array_equal(y, jnp.roll(x, 1, 1))):
        return False
    assert bool(jnp.array_equal(y, jnp.roll(x, -1, 1))), "unexpected pltpu.roll semantics"
    return True


# --------------------------------------------------------------------------
# rotary tables: (S, 2D) for the q|k slab; q half carries the 1/sqrt(DH) scale
# --------------------------------------------------------------------------
def build_rope_tables(cos, sin):
    f32 = jnp.float32
    ones = jnp.ones((S, DH - ROT), f32)
    zeros = jnp.zeros((S, DH - ROT), f32)
    z = jnp.zeros_like(sin)
    cos_h = jnp.concatenate([cos, cos, ones], axis=-1)      # (S, DH)
    sinp_h = jnp.concatenate([z, sin, zeros], axis=-1)      # pairs with roll(+ROT/2)
    sinm_h = jnp.concatenate([-sin, z, zeros], axis=-1)     # pairs with roll(-ROT/2)

    def headtile(t):
        return jnp.tile(t, (1, H))                          # (S, D)

    c, sp, sm = headtile(cos_h), headtile(sinp_h), headtile(sinm_h)
    scale = 1.0 / math.sqrt(DH)

    def qk_table(t):
        return jnp.concatenate([t * scale, t], axis=-1)     # (S, 2D): scaled-q | k

    return qk_table(c), qk_table(sp), qk_table(sm)


# --------------------------------------------------------------------------
# pure-JAX reference (f32) of the same forward pass
# --------------------------------------------------------------------------
def phi2_forward_ref(x, params, cos, sin):
    Bx, Sx, Dx = x.shape
    hidden = x
    L = params["wqkv"].shape[0]
    for l in range(L):
        ln_w = params["ln_w"][l, 0]
        ln_b = params["ln_b"][l, 0]
        wqkv = params["wqkv"][l].astype(jnp.float32)
        bqkv = params["bqkv"][l, 0]
        wout = params["wout"][l].astype(jnp.float32)
        bout = params["bout"][l, 0]
        fc1w = params["fc1w"][l].astype(jnp.float32)
        fc1b = params["fc1b"][l, 0]
        fc2w = params["fc2w"][l].astype(jnp.float32)
        fc2b = params["fc2b"][l, 0]

        mu = jnp.mean(hidden, -1, keepdims=True)
        var = jnp.mean((hidden - mu) ** 2, -1, keepdims=True)
        h = (hidden - mu) / jnp.sqrt(var + EPS) * ln_w + ln_b
        qkv = h @ wqkv + bqkv
        q, k, v = jnp.split(qkv, 3, axis=-1)
        q = q.reshape(Bx, Sx, H, DH)
        k = k.reshape(Bx, Sx, H, DH)
        v = v.reshape(Bx, Sx, H, DH)

        def rope(t):
            t1 = t[..., :ROT // 2]
            t2 = t[..., ROT // 2:ROT]
            tp = t[..., ROT:]
            c = cos[None, :, None, :]
            s = sin[None, :, None, :]
            return jnp.concatenate([t1 * c - t2 * s, t1 * s + t2 * c, tp], axis=-1)

        q, k = rope(q), rope(k)
        scores = jnp.einsum('bqhd,bkhd->bhqk', q, k) / math.sqrt(DH)
        if CAUSAL:
            m = jnp.tril(jnp.ones((Sx, Sx), bool))
            scores = jnp.where(m[None, None], scores, -1e30)
        p = jax.nn.softmax(scores, axis=-1)
        attn = jnp.einsum('bhqk,bkhd->bqhd', p, v).reshape(Bx, Sx, Dx)
        attn_out = attn @ wout + bout
        mlp_out = _gelu_new(h @ fc1w + fc1b) @ fc2w + fc2b
        hidden = attn_out + mlp_out + hidden
    return hidden


# --------------------------------------------------------------------------
# deterministic synthetic parameters (stacked over layers; MXU weights in bf16)
# --------------------------------------------------------------------------
def init_params(key):
    ks = jax.random.split(key, 8)
    std = 0.02
    f32, bf16 = jnp.float32, jnp.bfloat16
    return {
        "ln_w": 1.0 + 0.1 * jax.random.normal(ks[6], (N_LAYERS, 1, D), f32),
        "ln_b": 0.02 * jax.random.normal(ks[7], (N_LAYERS, 1, D), f32),
        "wqkv": (std * jax.random.normal(ks[0], (N_LAYERS, D, 3 * D), f32)).astype(bf16),
        "bqkv": std * jax.random.normal(ks[1], (N_LAYERS, 1, 3 * D), f32),
        "wout": (std * jax.random.normal(ks[2], (N_LAYERS, D, D), f32)).astype(bf16),
        "bout": jnp.zeros((N_LAYERS, 1, D), f32),
        "fc1w": (std * jax.random.normal(ks[3], (N_LAYERS, D, DFF), f32)).astype(bf16),
        "fc1b": std * jax.random.normal(ks[4], (N_LAYERS, 1, DFF), f32),
        "fc2w": (std * jax.random.normal(ks[5], (N_LAYERS, DFF, D), f32)).astype(bf16),
        "fc2b": jnp.zeros((N_LAYERS, 1, D), f32),
    }


if __name__ == "__main__":
    key = jax.random.PRNGKey(0)
    k_x, k_p = jax.random.split(key)

    x = jax.random.normal(k_x, (B, S, D), jnp.float32)
    params = init_params(k_p)

    # partial rotary tables (phi-2 style: rotary_dim, base 10000, non-interleaved)
    inv_freq = 1.0 / (10000.0 ** (jnp.arange(0, ROT, 2, dtype=jnp.float32) / ROT))
    pos = jnp.arange(S, dtype=jnp.float32)
    freqs = pos[:, None] * inv_freq[None, :]          # (S, ROT//2)
    cos, sin = jnp.cos(freqs), jnp.sin(freqs)

    cos2, sinp2, sinm2 = build_rope_tables(cos, sin)
    if _roll_is_reversed():
        # pltpu.roll shifts the other way on this build: swap the sin tables.
        sinp2, sinm2 = sinm2, sinp2

    out = phi2_forward(x, params, cos2, sinp2, sinm2)
    out = jax.block_until_ready(out)

    ref = phi2_forward_ref(x, params, cos, sin)
    assert out.shape == (B, S, D)
    err = float(jnp.max(jnp.abs(out - ref)))
    assert jnp.allclose(out, ref, atol=2e-2, rtol=2e-2), f"max abs err {err}"

    print("KERNEL_OK")
</pallas_src>

<mosaic_0001>
module attributes {stable_mosaic.version = 11 : i64} {
  func.func @_roll_probe_kernel(%arg0: memref<8x128xf32, #tpu.memory_space<vmem>>, %arg1: memref<8x128xf32, #tpu.memory_space<vmem>>) attributes {dimension_semantics = [], scalar_prefetch = 0 : i64, scratch_operands = 0 : i64, tpu.core_type = #tpu.core_type<tc>} {
    %c0 = arith.constant 0 : index
    %c0_0 = arith.constant 0 : index
    %0 = vector.load %arg0[%c0, %c0_0] : memref<8x128xf32, #tpu.memory_space<vmem>>, vector<8x128xf32>
    %c1_i32 = arith.constant 1 : i32
    %1 = tpu.dynamic_rotate %0 by %c1_i32 dim 1 : vector<8x128xf32>, i32 -> vector<8x128xf32>
    %c0_1 = arith.constant 0 : index
    %c0_2 = arith.constant 0 : index
    %2 = vector.load %arg1[%c0_1, %c0_2] : memref<8x128xf32, #tpu.memory_space<vmem>>, vector<8x128xf32>
    tpu.vector_store %arg1[%c0_1, %c0_2], %1 {strides = array<i32>} : memref<8x128xf32, #tpu.memory_space<vmem>>, vector<8x128xf32>,
    return
  }
}

</mosaic_0001>

<bundles_post_ra>
// kernel: tpu_custom_call.1
= control target key start
LH: loop header
LB: loop body
LE: loop exit
PB: predicated region body
PF: predicated region fallthrough
CT: control target
= control target key end

     0   :  { %6 = vsyncpa [#allocation3], 0  ;;  %s118_s0 = inlined_call_operand.hbm [shape: f32[8,128], index: 0, kind: input, shape index: {}]   ;;  %s119_s1 = inlined_call_operand.hbm [shape: f32[8,128], index: 1, kind: output, shape index: {}]  }
   0x1   :  { %7 = vsyncpa [#allocation4], 0  ;;  %s13_s8 = sshll.u32 %s118_s0, 4  ;;  %s99_s9 = smov [#allocation2]   ;;  %s14_s8 = int_to_ptr.hbm [resolvable:$true] %s13_s8 }
   0x2   :  { %s15_s10 = sshll.u32 %s99_s9, 4  ;;  %s16_s10 = int_to_ptr.vmem [resolvable:$true] %s15_s10 }
   0x3   :  { %18 = dma.hbm_to_vmem [thread:$0]  %s14_s8, 128, %s16_s10, [#allocation3]  }
   0x4   :  { %95 = dma.done.wait [#allocation3], 128  }
   0x5   :  { %96 = vsyncadd [#allocation3], 4294967168  ;;  %v23_v0 = vld [vmem:[#allocation2] sm:$0xff]  ;;  %s100_s11 = smov 1   ;;  %s101_s12 = smov [#allocation5]  }
   0x6   :  { %24 = vrot.lane.b32.xlu0 %v23_v0, %s100_s11  ;;  %s32_s13 = sshll.u32 %s101_s12, 4  ;;  %s34_s16 = sshll.u32 %s119_s1, 4  ;;  %s33_s13 = int_to_ptr.vmem [resolvable:$true] %s32_s13  ;;  %s35_s16 = int_to_ptr.hbm [resolvable:$true] %s34_s16 }
  0x78   :  { %v25_v1 = vpop.permute.xlu0 %24 }
  0x79   :  { %26 = vst [vmem:[#allocation5] sm:$0xff] %v25_v1 }
  0x7a   :  { %37 = dma.vmem_to_hbm [thread:$0]  %s33_s13, 128, %s35_s16, [#allocation4]  }
  0x7b   :  { %97 = dma.done.wait [#allocation4], 128  }
  0x7c   :  { %98 = vsyncadd [#allocation4], 4294967168 }
  0x7d   :  { %42 = vsyncpa [#allocation3], 1 }
  0x7e   :  { %43 = vsyncpa [#allocation4], 1 }

</bundles_post_ra>
